<compile_context>
chip_gen: v5e
topology: v5e:2x2
jax: 0.10.0
libtpu: 0.0.40
codegen_flags: <defaults>
</compile_context>

<pallas_src>
import math
import functools

import jax
import jax.numpy as jnp
from jax import lax
from jax.experimental import pallas as pl
from jax.experimental.pallas import tpu as pltpu


# ----------------------------------------------------------------------------
# Fused Pallas kernel: all GATConv layers + SAGPooling scorer + tanh, one call
# ----------------------------------------------------------------------------
def _fused_gat_encoder_kernel(*refs, num_layers, use_bf16):
    # refs layout:
    #   [0] x_ref [N, F_in], [1] mask_ref [N, N] (additive 0 / -1e30),
    #   then num_layers groups of (w, att_dst_fold, att_src_fold, bias),
    #   then scorer (w_row, w_dst_row, att_src, bias),
    #   then the single merged output ref [N, F_enc + 1].
    x_ref, mask_ref = refs[0], refs[1]
    layer_refs = refs[2:2 + 4 * num_layers]
    ws_row_ref, wds_row_ref, as_s_ref, bs_ref = refs[2 + 4 * num_layers:6 + 4 * num_layers]
    out_ref = refs[6 + 4 * num_layers]

    # Additive mask loaded ONCE; stays resident for every layer + the scorer.
    mask = mask_ref[...]                                              # [N, N] f32

    def attn_softmax(a_dst, a_src):
        # e[i,j] = leaky_relu(a_dst[i] + a_src[j], 0.2) + mask, softmax over j.
        e = a_dst + a_src                                             # [N, N]
        e = jnp.maximum(e, 0.2 * e)                                   # leaky relu
        e = e + mask
        e_max = jnp.max(e, axis=-1, keepdims=True)
        p = jnp.exp(e - e_max)                                        # masked -> 0
        denom = jnp.sum(p, axis=-1, keepdims=True)                    # >= 1 (self loop)
        return p * pl.reciprocal(denom, approx=True)                  # EUP reciprocal

    # --- GAT encoder: ReLU between layers, none after the last ---
    h = x_ref[...]                                                    # [N, F_in] f32
    for li in range(num_layers):
        w_ref, adf_ref, asf_ref, b_ref = layer_refs[4 * li:4 * li + 4]

        # Attention projections in pre-W ("folded") space -> independent of the
        # main matmul, so the MXU/VPU work can overlap.
        #   a_dst[i] = h[i] . (W @ att_dst^T)       (VPU mul + lane reduce, [N,1])
        #   a_src[j] = (att_src @ W^T) . h[j]       ([1,N] lane layout via MXU)
        a_dst = jnp.sum(h * adf_ref[...], axis=-1, keepdims=True)     # [N, 1]
        a_src = lax.dot_general(asf_ref[...], h, (((1,), (1,)), ((), ())),
                                preferred_element_type=jnp.float32)   # [1, N]

        # h_new = h @ W on the MXU (bf16 operands only when dims exceed a tile).
        if use_bf16:
            h_new = jnp.dot(h.astype(jnp.bfloat16),
                            w_ref[...].astype(jnp.bfloat16),
                            preferred_element_type=jnp.float32)       # [N, F_out]
        else:
            h_new = jnp.dot(h, w_ref[...], preferred_element_type=jnp.float32)

        alpha = attn_softmax(a_dst, a_src)                            # [N, N]

        if use_bf16:
            out = jnp.dot(alpha.astype(jnp.bfloat16),
                          h_new.astype(jnp.bfloat16),
                          preferred_element_type=jnp.float32)
        else:
            out = jnp.dot(alpha, h_new, preferred_element_type=jnp.float32)
        out = out + b_ref[...]
        if li < num_layers - 1:
            out = jnp.maximum(out, 0.0)                               # ReLU
        h = out                                                       # [N, F_out]

    f_enc = out_ref.shape[1] - 1
    out_ref[:, :f_enc] = h                                            # encoder output

    # --- SAGPooling scorer: GATConv(F_enc, 1) + tanh, no 1-lane-wide MXU ops ---
    # a_dst_s[i] = att_dst_s * (h[i] . w_s)   (att_dst folded into weight, VPU)
    a_dst_s = jnp.sum(h * wds_row_ref[...], axis=-1, keepdims=True)   # [N, 1]
    # h_s row ([1, N]) for the lane-broadcast of a_src and the alpha reduction.
    hs_row = lax.dot_general(ws_row_ref[...], h, (((1,), (1,)), ((), ())),
                             preferred_element_type=jnp.float32)      # [1, N]
    a_src_s = as_s_ref[...] * hs_row                                  # [1, N]
    alpha_s = attn_softmax(a_dst_s, a_src_s)                          # [N, N]
    # out[i] = sum_j alpha[i,j] * h_s[j]  -> VPU mul + lane reduce, [N, 1]
    pooled = jnp.sum(alpha_s * hs_row, axis=-1, keepdims=True)
    out_ref[:, f_enc:f_enc + 1] = jnp.tanh(pooled + bs_ref[...])      # score column


def _full_spec(shape):
    # whole-array block, single grid step
    return pl.BlockSpec(shape, lambda i: (0,) * len(shape))


def fused_gat_encoder(params, x, add_mask):
    """Runs the whole encoder + pooling scorer in a single pallas_call."""
    n, _ = x.shape
    layers = params["gat_layers"]
    scorer = params["scorer"]
    num_layers = len(layers)
    f_enc = layers[-1]["w"].shape[1]

    # bf16 MXU operands only pay off once a matmul dim exceeds one MXU tile; below
    # that, the casts are pure VPU overhead (and v5e has no bf16 VPU/EUP anyway).
    use_bf16 = max([n] + [max(p["w"].shape) for p in layers]) > 128

    flat_inputs = [x, add_mask]
    in_specs = [_full_spec(x.shape), _full_spec(add_mask.shape)]

    def add(arr):
        flat_inputs.append(arr)
        in_specs.append(_full_spec(arr.shape))

    # Encoder layers: fold att_dst / att_src into pre-W space in the wrapper
    # (one-time tiny matmuls, fused by XLA with the parameter feed).
    for p in layers:
        w, a_src, a_dst, b = p["w"], p["att_src"], p["att_dst"], p["bias"]
        add(w)                     # [F_in, F_out]
        add((w @ a_dst.T).T)       # att_dst fold, [1, F_in]   (VPU path)
        add((w @ a_src.T).T)       # att_src fold, [1, F_in]   (lane-layout contraction)
        add(b)                     # [1, F_out]
    # SAGPooling scorer GATConv(F_enc, 1)
    w_s = scorer["w"]                                   # [F_enc, 1]
    add(w_s.T)                                          # [1, F_enc]
    add((w_s * scorer["att_dst"][0, 0]).T)              # att_dst folded, [1, F_enc]
    add(scorer["att_src"])                              # [1, 1]
    add(scorer["bias"])                                 # [1, 1]

    kernel = functools.partial(_fused_gat_encoder_kernel,
                               num_layers=num_layers, use_bf16=use_bf16)
    merged = pl.pallas_call(
        kernel,
        out_shape=jax.ShapeDtypeStruct((n, f_enc + 1), jnp.float32),
        grid=(1,),
        in_specs=in_specs,
        out_specs=_full_spec((n, f_enc + 1)),
        compiler_params=pltpu.CompilerParams(dimension_semantics=("arbitrary",)),
    )(*flat_inputs)
    return merged[:, :f_enc], merged[:, f_enc]          # [N, F_enc], [N]


# ----------------------------------------------------------------------------
# Parameters / adjacency helpers
# ----------------------------------------------------------------------------
def _glorot(key, shape):
    fan_in, fan_out = shape[0], shape[-1]
    limit = math.sqrt(6.0 / (fan_in + fan_out))
    return jax.random.uniform(key, shape, jnp.float32, -limit, limit)


def init_params(key, num_node_features, hidden, num_layers, num_encoded):
    dims = [num_node_features] + [hidden] * (num_layers - 1) + [num_encoded]
    params = {"gat_layers": []}
    for li in range(num_layers):
        key, k1, k2, k3 = jax.random.split(key, 4)
        f_in, f_out = dims[li], dims[li + 1]
        params["gat_layers"].append({
            "w": _glorot(k1, (f_in, f_out)),
            "att_src": _glorot(k2, (1, f_out)),
            "att_dst": _glorot(k3, (1, f_out)),
            "bias": jnp.zeros((1, f_out), jnp.float32),
        })
    # SAGPooling scorer: GATConv(num_encoded, 1)
    key, k1, k2, k3 = jax.random.split(key, 4)
    params["scorer"] = {
        "w": _glorot(k1, (num_encoded, 1)),
        "att_src": _glorot(k2, (1, 1)),
        "att_dst": _glorot(k3, (1, 1)),
        "bias": jnp.zeros((1, 1), jnp.float32),
    }
    return params


def edge_index_to_mask(edge_index, n):
    """Additive attention mask: 0 on edges (adj[dst, src]=1 plus self loops), -1e30 off."""
    src, dst = edge_index[0], edge_index[1]
    adj = jnp.zeros((n, n), jnp.float32).at[dst, src].set(1.0)
    adj = jnp.maximum(adj, jnp.eye(n, dtype=jnp.float32))
    # f32 here; pass bf16 (sentinel -1e30 is representable) at scale to halve the DMA.
    return jnp.where(adj > 0.0, 0.0, -1e30)


# ----------------------------------------------------------------------------
# Forward pass
# ----------------------------------------------------------------------------
def graph_attention_model_pooling_forward(params, x, edge_index, ratio=0.5):
    n = x.shape[0]
    add_mask = edge_index_to_mask(edge_index, n)

    # One fused Pallas kernel: GAT encoder + SAGPooling scorer (tanh included).
    graph_out, score = fused_gat_encoder(params, x, add_mask)   # [N, F_enc], [N]

    # TODO(synk): top-k node selection (argsort) has no clean Pallas equivalent;
    # kept in plain JAX. The post-top-k scale + global max/mean pool is tiny and
    # left to XLA so it fuses with the gather (a dedicated kernel was pure launch
    # overhead).
    k = int(math.ceil(ratio * n))
    _, perm = lax.top_k(score, k)
    x_sel = jnp.take(graph_out, perm, axis=0) * jnp.take(score, perm)[:, None]  # [K, F_enc]

    # cat([global_max_pool, global_mean_pool], dim=1).squeeze()  (single graph)
    return jnp.concatenate([jnp.max(x_sel, axis=0), jnp.mean(x_sel, axis=0)], axis=0)


# ----------------------------------------------------------------------------
# Main
# ----------------------------------------------------------------------------
if __name__ == "__main__":
    # Small config consistent with the module's __init__ (scaled down):
    NUM_NODE_FEATURES = 32     # num_node_features
    GNN_HIDDEN = 32            # gnn_hidden_size
    NUM_GNN_HIDDEN = 3         # num_gnn_hidden (number of GAT layers)
    NUM_ENCODED = 16           # num_encoded_features
    N = 16                     # number of nodes in the graph

    key = jax.random.PRNGKey(0)
    key, kx, ke1, ke2, kp = jax.random.split(key, 5)

    # Node features
    x = jax.random.normal(kx, (N, NUM_NODE_FEATURES), jnp.float32)

    # Deterministic edge_index: bidirectional ring + a few extra random edges
    ring_src = jnp.arange(N, dtype=jnp.int32)
    ring_dst = (ring_src + 1) % N
    extra_src = jax.random.randint(ke1, (4,), 0, N, dtype=jnp.int32)
    extra_dst = jax.random.randint(ke2, (4,), 0, N, dtype=jnp.int32)
    edge_index = jnp.stack([
        jnp.concatenate([ring_src, ring_dst, extra_src]),
        jnp.concatenate([ring_dst, ring_src, extra_dst]),
    ])

    params = init_params(kp, NUM_NODE_FEATURES, GNN_HIDDEN, NUM_GNN_HIDDEN, NUM_ENCODED)

    out = graph_attention_model_pooling_forward(params, x, edge_index)
    out = jax.block_until_ready(out)

    assert out.shape == (2 * NUM_ENCODED,), out.shape
    assert bool(jnp.all(jnp.isfinite(out)))
    print("KERNEL_OK")
</pallas_src>

<mosaic_0001>
module attributes {stable_mosaic.version = 11 : i64} {
  func.func @_fused_gat_encoder_kernel(%arg0: i32, %arg1: memref<16x32xf32, #tpu.memory_space<vmem>>, %arg2: memref<16x16xf32, #tpu.memory_space<vmem>>, %arg3: memref<32x32xf32, #tpu.memory_space<vmem>>, %arg4: memref<1x32xf32, #tpu.memory_space<vmem>>, %arg5: memref<1x32xf32, #tpu.memory_space<vmem>>, %arg6: memref<1x32xf32, #tpu.memory_space<vmem>>, %arg7: memref<32x32xf32, #tpu.memory_space<vmem>>, %arg8: memref<1x32xf32, #tpu.memory_space<vmem>>, %arg9: memref<1x32xf32, #tpu.memory_space<vmem>>, %arg10: memref<1x32xf32, #tpu.memory_space<vmem>>, %arg11: memref<32x16xf32, #tpu.memory_space<vmem>>, %arg12: memref<1x32xf32, #tpu.memory_space<vmem>>, %arg13: memref<1x32xf32, #tpu.memory_space<vmem>>, %arg14: memref<1x16xf32, #tpu.memory_space<vmem>>, %arg15: memref<1x16xf32, #tpu.memory_space<vmem>>, %arg16: memref<1x16xf32, #tpu.memory_space<vmem>>, %arg17: memref<1x1xf32, #tpu.memory_space<vmem>>, %arg18: memref<1x1xf32, #tpu.memory_space<vmem>>, %arg19: memref<16x17xf32, #tpu.memory_space<vmem>>) attributes {dimension_semantics = [#tpu.dimension_semantics<arbitrary>], iteration_bounds = array<i64: 1>, scalar_prefetch = 0 : i64, scratch_operands = 0 : i64, tpu.core_type = #tpu.core_type<tc>, window_params = [{pipeline_mode = #tpu.pipeline_mode<synchronous>, transform_indices = @transform_0, window_bounds = array<i64: 16, 32>}, {pipeline_mode = #tpu.pipeline_mode<synchronous>, transform_indices = @transform_1, window_bounds = array<i64: 16, 16>}, {pipeline_mode = #tpu.pipeline_mode<synchronous>, transform_indices = @transform_2, window_bounds = array<i64: 32, 32>}, {pipeline_mode = #tpu.pipeline_mode<synchronous>, transform_indices = @transform_3, window_bounds = array<i64: 1, 32>}, {pipeline_mode = #tpu.pipeline_mode<synchronous>, transform_indices = @transform_4, window_bounds = array<i64: 1, 32>}, {pipeline_mode = #tpu.pipeline_mode<synchronous>, transform_indices = @transform_5, window_bounds = array<i64: 1, 32>}, {pipeline_mode = #tpu.pipeline_mode<synchronous>, transform_indices = @transform_6, window_bounds = array<i64: 32, 32>}, {pipeline_mode = #tpu.pipeline_mode<synchronous>, transform_indices = @transform_7, window_bounds = array<i64: 1, 32>}, {pipeline_mode = #tpu.pipeline_mode<synchronous>, transform_indices = @transform_8, window_bounds = array<i64: 1, 32>}, {pipeline_mode = #tpu.pipeline_mode<synchronous>, transform_indices = @transform_9, window_bounds = array<i64: 1, 32>}, {pipeline_mode = #tpu.pipeline_mode<synchronous>, transform_indices = @transform_10, window_bounds = array<i64: 32, 16>}, {pipeline_mode = #tpu.pipeline_mode<synchronous>, transform_indices = @transform_11, window_bounds = array<i64: 1, 32>}, {pipeline_mode = #tpu.pipeline_mode<synchronous>, transform_indices = @transform_12, window_bounds = array<i64: 1, 32>}, {pipeline_mode = #tpu.pipeline_mode<synchronous>, transform_indices = @transform_13, window_bounds = array<i64: 1, 16>}, {pipeline_mode = #tpu.pipeline_mode<synchronous>, transform_indices = @transform_14, window_bounds = array<i64: 1, 16>}, {pipeline_mode = #tpu.pipeline_mode<synchronous>, transform_indices = @transform_15, window_bounds = array<i64: 1, 16>}, {pipeline_mode = #tpu.pipeline_mode<synchronous>, transform_indices = @transform_16, window_bounds = array<i64: 1, 1>}, {pipeline_mode = #tpu.pipeline_mode<synchronous>, transform_indices = @transform_17, window_bounds = array<i64: 1, 1>}, {pipeline_mode = #tpu.pipeline_mode<synchronous>, transform_indices = @transform_18, window_bounds = array<i64: 16, 17>}]} {
    %c0 = arith.constant 0 : index
    %c0_0 = arith.constant 0 : index
    %0 = vector.load %arg2[%c0, %c0_0] : memref<16x16xf32, #tpu.memory_space<vmem>>, vector<16x16xf32>
    %c0_1 = arith.constant 0 : index
    %c0_2 = arith.constant 0 : index
    %1 = vector.load %arg1[%c0_1, %c0_2] : memref<16x32xf32, #tpu.memory_space<vmem>>, vector<16x32xf32>
    %c0_3 = arith.constant 0 : index
    %c0_4 = arith.constant 0 : index
    %2 = vector.load %arg4[%c0_3, %c0_4] : memref<1x32xf32, #tpu.memory_space<vmem>>, vector<1x32xf32>
    %3 = vector.broadcast %2 : vector<1x32xf32> to vector<16x32xf32>
    %4 = arith.mulf %1, %3 : vector<16x32xf32>
    %cst = arith.constant dense<0.000000e+00> : vector<16xf32>
    %5 = vector.multi_reduction <add>, %4, %cst [1] : vector<16x32xf32> to vector<16xf32>
    %6 = vector.shape_cast %5 : vector<16xf32> to vector<16x1xf32>
    %c0_5 = arith.constant 0 : index
    %c0_6 = arith.constant 0 : index
    %7 = vector.load %arg5[%c0_5, %c0_6] : memref<1x32xf32, #tpu.memory_space<vmem>>, vector<1x32xf32>
    %cst_7 = arith.constant dense<0.000000e+00> : vector<1x16xf32>
    %8 = tpu.matmul %7, %1, %cst_7 {dimension_numbers = #tpu.dot_dimension_numbers<[1], [1], [0], [0], [0, 0, 1, 0], [], []>} : vector<1x32xf32>, vector<16x32xf32>, vector<1x16xf32> -> vector<1x16xf32>
    %c0_8 = arith.constant 0 : index
    %c0_9 = arith.constant 0 : index
    %9 = vector.load %arg3[%c0_8, %c0_9] : memref<32x32xf32, #tpu.memory_space<vmem>>, vector<32x32xf32>
    %cst_10 = arith.constant dense<0.000000e+00> : vector<16x32xf32>
    %10 = tpu.matmul %1, %9, %cst_10 {dimension_numbers = #tpu.dot_dimension_numbers<[1], [0], [0], [1], [0, 0, 1, 1], [], []>} : vector<16x32xf32>, vector<32x32xf32>, vector<16x32xf32> -> vector<16x32xf32>
    %11 = vector.broadcast %6 : vector<16x1xf32> to vector<16x16xf32>
    %12 = vector.broadcast %8 : vector<1x16xf32> to vector<16x16xf32>
    %13 = arith.addf %11, %12 : vector<16x16xf32>
    %cst_11 = arith.constant 2.000000e-01 : f32
    %14 = vector.broadcast %cst_11 : f32 to vector<16x16xf32>
    %15 = arith.mulf %14, %13 : vector<16x16xf32>
    %16 = arith.maximumf %13, %15 : vector<16x16xf32>
    %17 = arith.addf %16, %0 : vector<16x16xf32>
    %cst_12 = arith.constant dense<0xFF800000> : vector<16xf32>
    %18 = vector.multi_reduction <maximumf>, %17, %cst_12 [1] : vector<16x16xf32> to vector<16xf32>
    %19 = vector.shape_cast %18 : vector<16xf32> to vector<16x1xf32>
    %20 = vector.broadcast %19 : vector<16x1xf32> to vector<16x16xf32>
    %21 = arith.subf %17, %20 : vector<16x16xf32>
    %22 = math.exp %21 : vector<16x16xf32>
    %cst_13 = arith.constant dense<0.000000e+00> : vector<16xf32>
    %23 = vector.multi_reduction <add>, %22, %cst_13 [1] : vector<16x16xf32> to vector<16xf32>
    %24 = vector.shape_cast %23 : vector<16xf32> to vector<16x1xf32>
    %25 = tpu.reciprocal %24 {approx = true} : vector<16x1xf32> -> vector<16x1xf32>
    %26 = vector.broadcast %25 : vector<16x1xf32> to vector<16x16xf32>
    %27 = arith.mulf %22, %26 : vector<16x16xf32>
    %cst_14 = arith.constant dense<0.000000e+00> : vector<16x32xf32>
    %28 = tpu.matmul %27, %10, %cst_14 {dimension_numbers = #tpu.dot_dimension_numbers<[1], [0], [0], [1], [0, 0, 1, 1], [], []>} : vector<16x16xf32>, vector<16x32xf32>, vector<16x32xf32> -> vector<16x32xf32>
    %c0_15 = arith.constant 0 : index
    %c0_16 = arith.constant 0 : index
    %29 = vector.load %arg6[%c0_15, %c0_16] : memref<1x32xf32, #tpu.memory_space<vmem>>, vector<1x32xf32>
    %30 = vector.broadcast %29 : vector<1x32xf32> to vector<16x32xf32>
    %31 = arith.addf %28, %30 : vector<16x32xf32>
    %cst_17 = arith.constant 0.000000e+00 : f32
    %32 = vector.broadcast %cst_17 : f32 to vector<16x32xf32>
    %33 = arith.maximumf %31, %32 : vector<16x32xf32>
    %c0_18 = arith.constant 0 : index
    %c0_19 = arith.constant 0 : index
    %34 = vector.load %arg8[%c0_18, %c0_19] : memref<1x32xf32, #tpu.memory_space<vmem>>, vector<1x32xf32>
    %35 = vector.broadcast %34 : vector<1x32xf32> to vector<16x32xf32>
    %36 = arith.mulf %33, %35 : vector<16x32xf32>
    %cst_20 = arith.constant dense<0.000000e+00> : vector<16xf32>
    %37 = vector.multi_reduction <add>, %36, %cst_20 [1] : vector<16x32xf32> to vector<16xf32>
    %38 = vector.shape_cast %37 : vector<16xf32> to vector<16x1xf32>
    %c0_21 = arith.constant 0 : index
    %c0_22 = arith.constant 0 : index
    %39 = vector.load %arg9[%c0_21, %c0_22] : memref<1x32xf32, #tpu.memory_space<vmem>>, vector<1x32xf32>
    %cst_23 = arith.constant dense<0.000000e+00> : vector<1x16xf32>
    %40 = tpu.matmul %39, %33, %cst_23 {dimension_numbers = #tpu.dot_dimension_numbers<[1], [1], [0], [0], [0, 0, 1, 0], [], []>} : vector<1x32xf32>, vector<16x32xf32>, vector<1x16xf32> -> vector<1x16xf32>
    %c0_24 = arith.constant 0 : index
    %c0_25 = arith.constant 0 : index
    %41 = vector.load %arg7[%c0_24, %c0_25] : memref<32x32xf32, #tpu.memory_space<vmem>>, vector<32x32xf32>
    %cst_26 = arith.constant dense<0.000000e+00> : vector<16x32xf32>
    %42 = tpu.matmul %33, %41, %cst_26 {dimension_numbers = #tpu.dot_dimension_numbers<[1], [0], [0], [1], [0, 0, 1, 1], [], []>} : vector<16x32xf32>, vector<32x32xf32>, vector<16x32xf32> -> vector<16x32xf32>
    %43 = vector.broadcast %38 : vector<16x1xf32> to vector<16x16xf32>
    %44 = vector.broadcast %40 : vector<1x16xf32> to vector<16x16xf32>
    %45 = arith.addf %43, %44 : vector<16x16xf32>
    %cst_27 = arith.constant 2.000000e-01 : f32
    %46 = vector.broadcast %cst_27 : f32 to vector<16x16xf32>
    %47 = arith.mulf %46, %45 : vector<16x16xf32>
    %48 = arith.maximumf %45, %47 : vector<16x16xf32>
    %49 = arith.addf %48, %0 : vector<16x16xf32>
    %cst_28 = arith.constant dense<0xFF800000> : vector<16xf32>
    %50 = vector.multi_reduction <maximumf>, %49, %cst_28 [1] : vector<16x16xf32> to vector<16xf32>
    %51 = vector.shape_cast %50 : vector<16xf32> to vector<16x1xf32>
    %52 = vector.broadcast %51 : vector<16x1xf32> to vector<16x16xf32>
    %53 = arith.subf %49, %52 : vector<16x16xf32>
    %54 = math.exp %53 : vector<16x16xf32>
    %cst_29 = arith.constant dense<0.000000e+00> : vector<16xf32>
    %55 = vector.multi_reduction <add>, %54, %cst_29 [1] : vector<16x16xf32> to vector<16xf32>
    %56 = vector.shape_cast %55 : vector<16xf32> to vector<16x1xf32>
    %57 = tpu.reciprocal %56 {approx = true} : vector<16x1xf32> -> vector<16x1xf32>
    %58 = vector.broadcast %57 : vector<16x1xf32> to vector<16x16xf32>
    %59 = arith.mulf %54, %58 : vector<16x16xf32>
    %cst_30 = arith.constant dense<0.000000e+00> : vector<16x32xf32>
    %60 = tpu.matmul %59, %42, %cst_30 {dimension_numbers = #tpu.dot_dimension_numbers<[1], [0], [0], [1], [0, 0, 1, 1], [], []>} : vector<16x16xf32>, vector<16x32xf32>, vector<16x32xf32> -> vector<16x32xf32>
    %c0_31 = arith.constant 0 : index
    %c0_32 = arith.constant 0 : index
    %61 = vector.load %arg10[%c0_31, %c0_32] : memref<1x32xf32, #tpu.memory_space<vmem>>, vector<1x32xf32>
    %62 = vector.broadcast %61 : vector<1x32xf32> to vector<16x32xf32>
    %63 = arith.addf %60, %62 : vector<16x32xf32>
    %cst_33 = arith.constant 0.000000e+00 : f32
    %64 = vector.broadcast %cst_33 : f32 to vector<16x32xf32>
    %65 = arith.maximumf %63, %64 : vector<16x32xf32>
    %c0_34 = arith.constant 0 : index
    %c0_35 = arith.constant 0 : index
    %66 = vector.load %arg12[%c0_34, %c0_35] : memref<1x32xf32, #tpu.memory_space<vmem>>, vector<1x32xf32>
    %67 = vector.broadcast %66 : vector<1x32xf32> to vector<16x32xf32>
    %68 = arith.mulf %65, %67 : vector<16x32xf32>
    %cst_36 = arith.constant dense<0.000000e+00> : vector<16xf32>
    %69 = vector.multi_reduction <add>, %68, %cst_36 [1] : vector<16x32xf32> to vector<16xf32>
    %70 = vector.shape_cast %69 : vector<16xf32> to vector<16x1xf32>
    %c0_37 = arith.constant 0 : index
    %c0_38 = arith.constant 0 : index
    %71 = vector.load %arg13[%c0_37, %c0_38] : memref<1x32xf32, #tpu.memory_space<vmem>>, vector<1x32xf32>
    %cst_39 = arith.constant dense<0.000000e+00> : vector<1x16xf32>
    %72 = tpu.matmul %71, %65, %cst_39 {dimension_numbers = #tpu.dot_dimension_numbers<[1], [1], [0], [0], [0, 0, 1, 0], [], []>} : vector<1x32xf32>, vector<16x32xf32>, vector<1x16xf32> -> vector<1x16xf32>
    %c0_40 = arith.constant 0 : index
    %c0_41 = arith.constant 0 : index
    %73 = vector.load %arg11[%c0_40, %c0_41] : memref<32x16xf32, #tpu.memory_space<vmem>>, vector<32x16xf32>
    %cst_42 = arith.constant dense<0.000000e+00> : vector<16x16xf32>
    %74 = tpu.matmul %65, %73, %cst_42 {dimension_numbers = #tpu.dot_dimension_numbers<[1], [0], [0], [1], [0, 0, 1, 1], [], []>} : vector<16x32xf32>, vector<32x16xf32>, vector<16x16xf32> -> vector<16x16xf32>
    %75 = vector.broadcast %70 : vector<16x1xf32> to vector<16x16xf32>
    %76 = vector.broadcast %72 : vector<1x16xf32> to vector<16x16xf32>
    %77 = arith.addf %75, %76 : vector<16x16xf32>
    %cst_43 = arith.constant 2.000000e-01 : f32
    %78 = vector.broadcast %cst_43 : f32 to vector<16x16xf32>
    %79 = arith.mulf %78, %77 : vector<16x16xf32>
    %80 = arith.maximumf %77, %79 : vector<16x16xf32>
    %81 = arith.addf %80, %0 : vector<16x16xf32>
    %cst_44 = arith.constant dense<0xFF800000> : vector<16xf32>
    %82 = vector.multi_reduction <maximumf>, %81, %cst_44 [1] : vector<16x16xf32> to vector<16xf32>
    %83 = vector.shape_cast %82 : vector<16xf32> to vector<16x1xf32>
    %84 = vector.broadcast %83 : vector<16x1xf32> to vector<16x16xf32>
    %85 = arith.subf %81, %84 : vector<16x16xf32>
    %86 = math.exp %85 : vector<16x16xf32>
    %cst_45 = arith.constant dense<0.000000e+00> : vector<16xf32>
    %87 = vector.multi_reduction <add>, %86, %cst_45 [1] : vector<16x16xf32> to vector<16xf32>
    %88 = vector.shape_cast %87 : vector<16xf32> to vector<16x1xf32>
    %89 = tpu.reciprocal %88 {approx = true} : vector<16x1xf32> -> vector<16x1xf32>
    %90 = vector.broadcast %89 : vector<16x1xf32> to vector<16x16xf32>
    %91 = arith.mulf %86, %90 : vector<16x16xf32>
    %cst_46 = arith.constant dense<0.000000e+00> : vector<16x16xf32>
    %92 = tpu.matmul %91, %74, %cst_46 {dimension_numbers = #tpu.dot_dimension_numbers<[1], [0], [0], [1], [0, 0, 1, 1], [], []>} : vector<16x16xf32>, vector<16x16xf32>, vector<16x16xf32> -> vector<16x16xf32>
    %c0_47 = arith.constant 0 : index
    %c0_48 = arith.constant 0 : index
    %93 = vector.load %arg14[%c0_47, %c0_48] : memref<1x16xf32, #tpu.memory_space<vmem>>, vector<1x16xf32>
    %94 = vector.broadcast %93 : vector<1x16xf32> to vector<16x16xf32>
    %95 = arith.addf %92, %94 : vector<16x16xf32>
    %c0_49 = arith.constant 0 : index
    %c0_50 = arith.constant 0 : index
    %96 = vector.load %arg19[%c0_49, %c0_50] : memref<16x17xf32, #tpu.memory_space<vmem>>, vector<16x16xf32>
    tpu.vector_store %arg19[%c0_49, %c0_50], %95 {strides = array<i32>} : memref<16x17xf32, #tpu.memory_space<vmem>>, vector<16x16xf32>,
    %c0_51 = arith.constant 0 : index
    %c0_52 = arith.constant 0 : index
    %97 = vector.load %arg16[%c0_51, %c0_52] : memref<1x16xf32, #tpu.memory_space<vmem>>, vector<1x16xf32>
    %98 = vector.broadcast %97 : vector<1x16xf32> to vector<16x16xf32>
    %99 = arith.mulf %95, %98 : vector<16x16xf32>
    %cst_53 = arith.constant dense<0.000000e+00> : vector<16xf32>
    %100 = vector.multi_reduction <add>, %99, %cst_53 [1] : vector<16x16xf32> to vector<16xf32>
    %101 = vector.shape_cast %100 : vector<16xf32> to vector<16x1xf32>
    %c0_54 = arith.constant 0 : index
    %c0_55 = arith.constant 0 : index
    %102 = vector.load %arg15[%c0_54, %c0_55] : memref<1x16xf32, #tpu.memory_space<vmem>>, vector<1x16xf32>
    %cst_56 = arith.constant dense<0.000000e+00> : vector<1x16xf32>
    %103 = tpu.matmul %102, %95, %cst_56 {dimension_numbers = #tpu.dot_dimension_numbers<[1], [1], [0], [0], [0, 0, 1, 0], [], []>} : vector<1x16xf32>, vector<16x16xf32>, vector<1x16xf32> -> vector<1x16xf32>
    %c0_57 = arith.constant 0 : index
    %c0_58 = arith.constant 0 : index
    %104 = vector.load %arg17[%c0_57, %c0_58] : memref<1x1xf32, #tpu.memory_space<vmem>>, vector<1x1xf32>
    %105 = vector.broadcast %104 : vector<1x1xf32> to vector<1x16xf32>
    %106 = arith.mulf %105, %103 : vector<1x16xf32>
    %107 = vector.broadcast %101 : vector<16x1xf32> to vector<16x16xf32>
    %108 = vector.broadcast %106 : vector<1x16xf32> to vector<16x16xf32>
    %109 = arith.addf %107, %108 : vector<16x16xf32>
    %cst_59 = arith.constant 2.000000e-01 : f32
    %110 = vector.broadcast %cst_59 : f32 to vector<16x16xf32>
    %111 = arith.mulf %110, %109 : vector<16x16xf32>
    %112 = arith.maximumf %109, %111 : vector<16x16xf32>
    %113 = arith.addf %112, %0 : vector<16x16xf32>
    %cst_60 = arith.constant dense<0xFF800000> : vector<16xf32>
    %114 = vector.multi_reduction <maximumf>, %113, %cst_60 [1] : vector<16x16xf32> to vector<16xf32>
    %115 = vector.shape_cast %114 : vector<16xf32> to vector<16x1xf32>
    %116 = vector.broadcast %115 : vector<16x1xf32> to vector<16x16xf32>
    %117 = arith.subf %113, %116 : vector<16x16xf32>
    %118 = math.exp %117 : vector<16x16xf32>
    %cst_61 = arith.constant dense<0.000000e+00> : vector<16xf32>
    %119 = vector.multi_reduction <add>, %118, %cst_61 [1] : vector<16x16xf32> to vector<16xf32>
    %120 = vector.shape_cast %119 : vector<16xf32> to vector<16x1xf32>
    %121 = tpu.reciprocal %120 {approx = true} : vector<16x1xf32> -> vector<16x1xf32>
    %122 = vector.broadcast %121 : vector<16x1xf32> to vector<16x16xf32>
    %123 = arith.mulf %118, %122 : vector<16x16xf32>
    %124 = vector.broadcast %103 : vector<1x16xf32> to vector<16x16xf32>
    %125 = arith.mulf %123, %124 : vector<16x16xf32>
    %cst_62 = arith.constant dense<0.000000e+00> : vector<16xf32>
    %126 = vector.multi_reduction <add>, %125, %cst_62 [1] : vector<16x16xf32> to vector<16xf32>
    %127 = vector.shape_cast %126 : vector<16xf32> to vector<16x1xf32>
    %c0_63 = arith.constant 0 : index
    %c0_64 = arith.constant 0 : index
    %128 = vector.load %arg18[%c0_63, %c0_64] : memref<1x1xf32, #tpu.memory_space<vmem>>, vector<1x1xf32>
    %129 = vector.broadcast %128 : vector<1x1xf32> to vector<16x1xf32>
    %130 = arith.addf %127, %129 : vector<16x1xf32>
    %131 = math.tanh %130 : vector<16x1xf32>
    %c0_65 = arith.constant 0 : index
    %c16 = arith.constant 16 : index
    %132 = vector.load %arg19[%c0_65, %c16] : memref<16x17xf32, #tpu.memory_space<vmem>>, vector<16x1xf32>
    tpu.vector_store %arg19[%c0_65, %c16], %131 {strides = array<i32>} : memref<16x17xf32, #tpu.memory_space<vmem>>, vector<16x1xf32>,
    return
  }
  func.func @transform_0(%arg0: i32) -> (i32, i32) {
    %c0_i32 = arith.constant 0 : i32
    %c0_i32_0 = arith.constant 0 : i32
    %c0_i32_1 = arith.constant 0 : i32
    return %c0_i32, %c0_i32_0 : i32, i32
  }
  func.func @transform_1(%arg0: i32) -> (i32, i32) {
    %c0_i32 = arith.constant 0 : i32
    %c0_i32_0 = arith.constant 0 : i32
    %c0_i32_1 = arith.constant 0 : i32
    return %c0_i32, %c0_i32_0 : i32, i32
  }
  func.func @transform_2(%arg0: i32) -> (i32, i32) {
    %c0_i32 = arith.constant 0 : i32
    %c0_i32_0 = arith.constant 0 : i32
    %c0_i32_1 = arith.constant 0 : i32
    return %c0_i32, %c0_i32_0 : i32, i32
  }
  func.func @transform_3(%arg0: i32) -> (i32, i32) {
    %c0_i32 = arith.constant 0 : i32
    %c0_i32_0 = arith.constant 0 : i32
    %c0_i32_1 = arith.constant 0 : i32
    return %c0_i32, %c0_i32_0 : i32, i32
  }
  func.func @transform_4(%arg0: i32) -> (i32, i32) {
    %c0_i32 = arith.constant 0 : i32
    %c0_i32_0 = arith.constant 0 : i32
    %c0_i32_1 = arith.constant 0 : i32
    return %c0_i32, %c0_i32_0 : i32, i32
  }
  func.func @transform_5(%arg0: i32) -> (i32, i32) {
    %c0_i32 = arith.constant 0 : i32
    %c0_i32_0 = arith.constant 0 : i32
    %c0_i32_1 = arith.constant 0 : i32
    return %c0_i32, %c0_i32_0 : i32, i32
  }
  func.func @transform_6(%arg0: i32) -> (i32, i32) {
    %c0_i32 = arith.constant 0 : i32
    %c0_i32_0 = arith.constant 0 : i32
    %c0_i32_1 = arith.constant 0 : i32
    return %c0_i32, %c0_i32_0 : i32, i32
  }
  func.func @transform_7(%arg0: i32) -> (i32, i32) {
    %c0_i32 = arith.constant 0 : i32
    %c0_i32_0 = arith.constant 0 : i32
    %c0_i32_1 = arith.constant 0 : i32
    return %c0_i32, %c0_i32_0 : i32, i32
  }
  func.func @transform_8(%arg0: i32) -> (i32, i32) {
    %c0_i32 = arith.constant 0 : i32
    %c0_i32_0 = arith.constant 0 : i32
    %c0_i32_1 = arith.constant 0 : i32
    return %c0_i32, %c0_i32_0 : i32, i32
  }
  func.func @transform_9(%arg0: i32) -> (i32, i32) {
    %c0_i32 = arith.constant 0 : i32
    %c0_i32_0 = arith.constant 0 : i32
    %c0_i32_1 = arith.constant 0 : i32
    return %c0_i32, %c0_i32_0 : i32, i32
  }
  func.func @transform_10(%arg0: i32) -> (i32, i32) {
    %c0_i32 = arith.constant 0 : i32
    %c0_i32_0 = arith.constant 0 : i32
    %c0_i32_1 = arith.constant 0 : i32
    return %c0_i32, %c0_i32_0 : i32, i32
  }
  func.func @transform_11(%arg0: i32) -> (i32, i32) {
    %c0_i32 = arith.constant 0 : i32
    %c0_i32_0 = arith.constant 0 : i32
    %c0_i32_1 = arith.constant 0 : i32
    return %c0_i32, %c0_i32_0 : i32, i32
  }
  func.func @transform_12(%arg0: i32) -> (i32, i32) {
    %c0_i32 = arith.constant 0 : i32
    %c0_i32_0 = arith.constant 0 : i32
    %c0_i32_1 = arith.constant 0 : i32
    return %c0_i32, %c0_i32_0 : i32, i32
  }
  func.func @transform_13(%arg0: i32) -> (i32, i32) {
    %c0_i32 = arith.constant 0 : i32
    %c0_i32_0 = arith.constant 0 : i32
    %c0_i32_1 = arith.constant 0 : i32
    return %c0_i32, %c0_i32_0 : i32, i32
  }
  func.func @transform_14(%arg0: i32) -> (i32, i32) {
    %c0_i32 = arith.constant 0 : i32
    %c0_i32_0 = arith.constant 0 : i32
    %c0_i32_1 = arith.constant 0 : i32
    return %c0_i32, %c0_i32_0 : i32, i32
  }
  func.func @transform_15(%arg0: i32) -> (i32, i32) {
    %c0_i32 = arith.constant 0 : i32
    %c0_i32_0 = arith.constant 0 : i32
    %c0_i32_1 = arith.constant 0 : i32
    return %c0_i32, %c0_i32_0 : i32, i32
  }
  func.func @transform_16(%arg0: i32) -> (i32, i32) {
    %c0_i32 = arith.constant 0 : i32
    %c0_i32_0 = arith.constant 0 : i32
    %c0_i32_1 = arith.constant 0 : i32
    return %c0_i32, %c0_i32_0 : i32, i32
  }
  func.func @transform_17(%arg0: i32) -> (i32, i32) {
    %c0_i32 = arith.constant 0 : i32
    %c0_i32_0 = arith.constant 0 : i32
    %c0_i32_1 = arith.constant 0 : i32
    return %c0_i32, %c0_i32_0 : i32, i32
  }
  func.func @transform_18(%arg0: i32) -> (i32, i32) {
    %c0_i32 = arith.constant 0 : i32
    %c0_i32_0 = arith.constant 0 : i32
    %c0_i32_1 = arith.constant 0 : i32
    return %c0_i32, %c0_i32_0 : i32, i32
  }
}

</mosaic_0001>

<bundles_post_ra>
// kernel: tpu_custom_call.1
= control target key start
LH: loop header
LB: loop body
LE: loop exit
PB: predicated region body
PF: predicated region fallthrough
CT: control target
= control target key end

     0   :  { %s1045_s0 = inlined_call_operand.vmem [shape: f32[16,32], index: 0, kind: input, shape index: {}]   ;;  %s1046_s1 = inlined_call_operand.hbm [shape: f32[16,16], index: 1, kind: input, shape index: {}]   ;;  %s1047_s2 = inlined_call_operand.vmem [shape: f32[32,32], index: 2, kind: input, shape index: {}]   ;;  %s1048_s3 = inlined_call_operand.vmem [shape: f32[1,32], index: 3, kind: input, shape index: {}]   ;;  %s1049_s4 = inlined_call_operand.vmem [shape: f32[1,32], index: 4, kind: input, shape index: {}]   ;;  %s1050_s5 = inlined_call_operand.vmem [shape: f32[1,32], index: 5, kind: input, shape index: {}]   ;;  %s1051_s6 = inlined_call_operand.hbm [shape: f32[32,32], index: 6, kind: input, shape index: {}]   ;;  %s1052_s7 = inlined_call_operand.vmem [shape: f32[1,32], index: 7, kind: input, shape index: {}]   ;;  %s1053_s8 = inlined_call_operand.vmem [shape: f32[1,32], index: 8, kind: input, shape index: {}]   ;;  %s1054_s9 = inlined_call_operand.vmem [shape: f32[1,32], index: 9, kind: input, shape index: {}]   ;;  %s1055_s10 = inlined_call_operand.vmem [shape: f32[32,16], index: 10, kind: input, shape index: {}]   ;;  %s1056_s11 = inlined_call_operand.vmem [shape: f32[1,32], index: 11, kind: input, shape index: {}]   ;;  %s1057_s12 = inlined_call_operand.vmem [shape: f32[1,32], index: 12, kind: input, shape index: {}]   ;;  %s1058_s13 = inlined_call_operand.vmem [shape: f32[1,16], index: 13, kind: input, shape index: {}]   ;;  %s1059_s14 = inlined_call_operand.vmem [shape: f32[1,16], index: 14, kind: input, shape index: {}]   ;;  %s1060_s15 = inlined_call_operand.vmem [shape: f32[1,16], index: 15, kind: input, shape index: {}]   ;;  %s1061_s16 = inlined_call_operand.<no memory space> [shape: f32[1,1], index: 16, kind: input, shape index: {}]   ;;  %s1062_s18 = inlined_call_operand.hbm [shape: f32[16,17], index: 18, kind: output, shape index: {}]   ;;  %s1063_s17 = inlined_call_operand.<no memory space> [shape: f32[1,1], index: 17, kind: input, shape index: {}]  }
   0x1   :  { %1066 = sst [smem:[#allocation13_spill]] %s1045_s0  ;;  %v23_v0 = vstv %s1061_s16  ;;  %v25_v1 = vstv %s1063_s17 }
   0x2   :  { %1067 = sst [smem:[#allocation14_spill]] %s1046_s1  ;;  %24 = vst [vmem:[#allocation2] sm:$0x1] %v23_v0 }
   0x3   :  { %1068 = sst [smem:[#allocation15_spill]] %s1047_s2  ;;  %26 = vst [vmem:[#allocation3] sm:$0x1] %v25_v1 }
   0x4   :  { %27 = vsyncpa [#allocation5], 0 }
   0x5   :  { %28 = vsyncpa [#allocation8], 0 }
   0x6   :  { %29 = vsyncpa [#allocation6], 0  ;;  %s1069_s1 = sld [smem:[#allocation14_spill]]  ;;  %s792_s21 = smov [#allocation4]  }
   0x7   :  { %s38_s22 = sshll.u32 %s792_s21, 4  ;;  %s57_s16 = sshll.u32 %s1051_s6, 4  ;;  %s39_s22 = int_to_ptr.vmem [resolvable:$true] %s38_s22  ;;  %s58_s16 = int_to_ptr.hbm [resolvable:$true] %s57_s16 }
   0x8   :  { %s793_s24 = smov 128   ;;  %s794_s25 = smov 8  }
   0x9   :  { %s795_s17 = smov [#allocation7]  }
   0xa   :  { %s59_s26 = sshll.u32 %s795_s17, 4  ;;  %s60_s26 = int_to_ptr.vmem [resolvable:$true] %s59_s26 }
   0xb   :  { %65 = dma.hbm_to_vmem [thread:$0]  %s58_s16, 512, %s60_s26, [#allocation8], %s793_s24, %s793_s24, %s794_s25  }
   0xc   :  { %s36_s20 = sshll.u32 %s1069_s1, 4  ;;  %s37_s20 = int_to_ptr.hbm [resolvable:$true] %s36_s20 }
   0xd   :  { %44 = dma.hbm_to_vmem [thread:$0]  %s37_s20, 256, %s39_s22, [#allocation5], %s793_s24, %s793_s24, %s794_s25  }
   0xe   :  { %786 = dma.done.wait [#allocation5], 256  }
   0xf   :  { %787 = vsyncadd [#allocation5], 4294967040 }
  0x10   :  { %788 = dma.done.wait [#allocation8], 512  }
  0x11   :  { %789 = vsyncadd [#allocation8], 4294966784  ;;  %vm106_vm0 = vcmask 261120   ;;  %s1070_s28 = sld [smem:[#allocation13_spill]]  ;;  %v670_v4 = vld [vmem:[%s1048_s3] ss:$0 sm:$0xff] }
  0x12   :  { %v113_v6 = vld [vmem:[%s1049_s4] sm:$0x1]  ;;  %s1071_s2 = sld [smem:[#allocation15_spill]]  ;;  %v943_v21 = vld [vmem:[#allocation4 + $0x8] sm:$0xff]  ;;  %vm179_vm1 = vcmask 130048   ;;  %v947_v27 = vld [vmem:[#allocation4] sm:$0xff] }
  0x13   :  { %v282_v48 = vld [vmem:[#allocation7 + $0x18] sm:$0xff]  ;;  %v281_v49 = vld [vmem:[#allocation7 + $0x10] sm:$0xff]  ;;  %v280_v50 = vld [vmem:[#allocation7 + $0x8] sm:$0xff]  ;;  %vm613_vm2 = vcmask 138368   ;;  %s798_s26 = smov [#allocation9]   ;;  %s622_s29 = sshll.u32 %s1062_s18, 4  ;;  %s623_s29 = int_to_ptr.hbm [resolvable:$true] %s622_s29 }
  0x14   :  { %v279_v51 = vld [vmem:[#allocation7] sm:$0xff]  ;;  %v671_v52 = vld [vmem:[%s1050_s5] ss:$0 sm:$0xff]  ;;  %s620_s6 = sshll.u32 %s798_s26, 4  ;;  %s621_s6 = int_to_ptr.vmem [resolvable:$true] %s620_s6 }
  0x15   :  { %v672_v55 = vld [vmem:[%s1052_s7] ss:$0 sm:$0xff] }
  0x16   :  { %v249_v62 = vld [vmem:[%s1053_s8] sm:$0x1] }
  0x17   :  { %v99_v2 = vld [vmem:[%s1070_s28 + $0x8] sm:$0xff]  ;;  %v98_v3 = vld [vmem:[%s1070_s28] sm:$0xff] }
  0x18   :  { %636 = vmatpush.xpose.msk.msra.mxu0 %vm106_vm0, %v99_v2  ;;  %v105_v5 = vmul.f32 %v670_v4, %v99_v2  ;;  %v104_v8 = vmul.f32 %v670_v4, %v98_v3  ;;  %v146_v10 = vld [vmem:[%s1071_s2 + $0x18] sm:$0xff]  ;;  %v145_v11 = vld [vmem:[%s1071_s2 + $0x10] sm:$0xff]  ;;  %v144_v13 = vld [vmem:[%s1071_s2 + $0x8] sm:$0xff] }
  0x19   :  { %159 = vmatpush.msra.mxu1 %v146_v10  ;;  %v143_v14 = vld [vmem:[%s1071_s2] sm:$0xff] }
  0x1a   :  { %v110_v7 = vsel %vm106_vm0, %v105_v5, 0.0  ;;  %v107_v9 = vsel %vm106_vm0, %v104_v8, 0.0 }
  0x1b   :  { %111 = vadd.xlane.f32.xlu0 %v110_v7  ;;  %160 = vmatpush.msra.mxu1 %v145_v11 }
  0x1c   :  { %637 = vmatpush.xpose.msk.msra.mxu0 %vm106_vm0, %v98_v3 }
  0x1d   :  { %161 = vmatpush.msra.mxu1 %v144_v13 }
  0x1f   :  { %638 = vmatmul.msk.f32.vlgmr.msra.gmra.mxu0 %vm106_vm0, %v113_v6  ;;  %162 = vmatpush.msra.mxu1 %v143_v14 }
  0x20   :  { %639 = vmatmul.msk.f32.vlgmr.msra.gmra.mxu1 %vm106_vm0, %v98_v3  ;;  %295 = vmatpush.msrb.mxu0 %v282_v48 }
  0x22   :  { %296 = vmatpush.msrb.mxu0 %v281_v49 }
  0x23   :  { %108 = vadd.xlane.f32.xlu0 %v107_v9 }
  0x24   :  { %297 = vmatpush.msrb.mxu0 %v280_v50 }
  0x26   :  { %298 = vmatpush.msrb.mxu0 %v279_v51  ;;  %v384_v51 = vld [vmem:[%s1057_s12] sm:$0x1] }
  0x28   :  { %640 = vmatmul.msk.f32.gmra.mxu1 %vm106_vm0, %v99_v2 }
  0x8e   :  { %v112_v12 = vpop.xlane.xlu0 %111 }
  0x96   :  { %v109_v16 = vpop.xlane.xlu0 %108 }
  0x9c   :  { %v140_v15 = vpop.f32.mrf.mxu0 }
  0x9d   :  { %v170_v17 = vperm.slane %v140_v15, 0  ;;  %v164_v30 = vpop.f32.mrf.mxu1 }
  0x9f   :  { %v172_v18 = vadd.f32 %v170_v17, %v112_v12  ;;  %v171_v19 = vadd.f32 %v170_v17, %v109_v16 }
  0xa1   :  { %v174_v20 = vmul.f32 0.2, %v172_v18  ;;  %v173_v22 = vmul.f32 0.2, %v171_v19 }
  0xa3   :  { %v176_v23 = vmax.f32 %v172_v18, %v174_v20  ;;  %v175_v25 = vmax.f32 %v171_v19, %v173_v22 }
  0xa5   :  { %v178_v24 = vadd.f32 %v176_v23, %v943_v21  ;;  %v177_v28 = vadd.f32 %v175_v25, %v947_v27  ;;  %v167_v33 = vpop.f32.mrf.mxu1 }
  0xa6   :  { %226 = vmatpush.msra.mxu2 %v167_v33  ;;  %660 = vmatpush.msra.mxu3 %v167_v33 }
  0xa7   :  { %v183_v26 = vsel %vm179_vm1, %v178_v24, -inf  ;;  %v180_v29 = vsel %vm179_vm1, %v177_v28, -inf }
  0xa8   :  { %184 = vmax.xlane.f32.xlu1 %v183_v26  ;;  %227 = vmatpush.msra.mxu2 %v164_v30 }
  0xa9   :  { %661 = vmatpush.msra.mxu3 %v164_v30 }
  0xb0   :  { %181 = vmax.xlane.f32.xlu1 %v180_v29  ;;  %v417_v29 = vld [vmem:[%s1055_s10 + $0x18] sm:$0xff] }
  0xb1   :  { %430 = vmatpush.msrb.mxu1 %v417_v29 }
 0x11b   :  { %v185_v31 = vpop.xlane.xlu1 %184 }
 0x11c   :  { %v187_v32 = vsub.f32 %v178_v24, %v185_v31 }
 0x11e   :  { %v190_v34 = vmul.f32 1.442695, %v187_v32 }
 0x120   :  { %678 = vpow2.f32 %v190_v34 }
 0x123   :  { %v182_v35 = vpop.xlane.xlu1 %181 }
 0x124   :  { %v186_v36 = vsub.f32 %v177_v28, %v182_v35 }
 0x126   :  { %v679_v37 = vpop.eup %678  ;;  %v188_v38 = vmul.f32 1.442695, %v186_v36  ;;  %v416_v36 = vld [vmem:[%s1055_s10 + $0x10] sm:$0xff] }
 0x127   :  { %v195_v39 = vsel %vm179_vm1, %v679_v37, 0.0  ;;  %431 = vmatpush.msrb.mxu1 %v416_v36 }
 0x128   :  { %680 = vpow2.f32 %v188_v38  ;;  %196 = vadd.xlane.f32.xlu2 %v195_v39  ;;  %v414_v38 = vld [vmem:[%s1055_s10] sm:$0xff] }
 0x129   :  { %v673_v39 = vld [vmem:[%s1054_s9] ss:$0 sm:$0xff] }
 0x12e   :  { %v681_v40 = vpop.eup %680 }
 0x12f   :  { %v192_v41 = vsel %vm179_vm1, %v681_v40, 0.0 }
 0x130   :  { %193 = vadd.xlane.f32.xlu2 %v192_v41 }
 0x19b   :  { %v197_v42 = vpop.xlane.xlu2 %196 }
 0x19c   :  { %682 = vrcp.f32 %v197_v42  ;;  %v674_v42 = vld [vmem:[%s1056_s11] ss:$0 sm:$0xff] }
 0x1a2   :  { %v683_v43 = vpop.eup %682 }
 0x1a3   :  { %v194_v44 = vpop.xlane.xlu2 %193  ;;  %v201_v45 = vmul.f32 %v683_v43, %v679_v37  ;;  %v415_v37 = vld [vmem:[%s1055_s10 + $0x8] sm:$0xff] }
 0x1a4   :  { %684 = vrcp.f32 %v194_v44  ;;  %432 = vmatpush.msrb.mxu1 %v415_v37 }
 0x1a5   :  { %642 = vmatmul.msk.f32.vlgmr.msra.gmra.mxu3 %vm179_vm1, %v201_v45 }
 0x1a6   :  { %433 = vmatpush.msrb.mxu1 %v414_v38 }
 0x1aa   :  { %v685_v46 = vpop.eup %684 }
 0x1ab   :  { %v200_v47 = vmul.f32 %v685_v46, %v681_v40 }
 0x1ad   :  { %641 = vmatmul.msk.f32.vlgmr.msra.gmra.mxu2 %vm179_vm1, %v200_v47 }
 0x228   :  { %v232_v53 = vpop.f32.mrf.mxu3 }
 0x229   :  { %v233_v54 = vadd.f32 %v671_v52, %v232_v53 }
 0x22b   :  { %v236_v56 = vmax.f32 %v233_v54, 0.0 }
 0x22d   :  { %643 = vmatpush.xpose.msk.msrb.mxu3 %vm106_vm0, %v236_v56  ;;  %v242_v57 = vmul.f32 %v672_v55, %v236_v56 }
 0x22f   :  { %v246_v58 = vsel %vm106_vm0, %v242_v57, 0.0 }
 0x230   :  { %247 = vadd.xlane.f32.xlu1 %v246_v58  ;;  %v229_v59 = vpop.f32.mrf.mxu2 }
 0x231   :  { %v230_v60 = vadd.f32 %v671_v52, %v229_v59 }
 0x233   :  { %v235_v61 = vmax.f32 %v230_v60, 0.0 }
 0x235   :  { %644 = vmatpush.xpose.msk.msrb.mxu3 %vm106_vm0, %v235_v61  ;;  %646 = vmatmul.msk.f32.vlgmr.msrb.gmra.mxu0 %vm106_vm0, %v235_v61  ;;  %v241_v63 = vmul.f32 %v672_v55, %v235_v61 }
 0x237   :  { %v243_v0 = vsel %vm106_vm0, %v241_v63, 0.0 }
 0x238   :  { %645 = vmatmul.msk.f32.vlgmr.msrb.gmra.mxu3 %vm106_vm0, %v249_v62  ;;  %244 = vadd.xlane.f32.xlu0 %v243_v0 }
 0x23d   :  { %647 = vmatmul.msk.f32.gmra.mxu0 %vm106_vm0, %v236_v56 }
 0x2a3   :  { %v248_v5 = vpop.xlane.xlu1 %247 }
 0x2ab   :  { %v245_v6 = vpop.xlane.xlu0 %244 }
 0x2b2   :  { %v300_v1 = vpop.f32.mrf.mxu0 }
 0x2ba   :  { %v303_v2 = vpop.f32.mrf.mxu0 }
 0x2bb   :  { %v276_v3 = vpop.f32.mrf.mxu3  ;;  %361 = vmatpush.msra.mxu3 %v303_v2 }
 0x2bc   :  { %v306_v4 = vperm.slane %v276_v3, 0 }
 0x2bd   :  { %362 = vmatpush.msra.mxu3 %v300_v1 }
 0x2be   :  { %v307_v7 = vadd.f32 %v306_v4, %v245_v6  ;;  %v308_v8 = vadd.f32 %v306_v4, %v248_v5 }
 0x2c0   :  { %v309_v9 = vmul.f32 0.2, %v307_v7  ;;  %v310_v10 = vmul.f32 0.2, %v308_v8 }
 0x2c2   :  { %v311_v11 = vmax.f32 %v307_v7, %v309_v9  ;;  %v312_v12 = vmax.f32 %v308_v8, %v310_v10 }
 0x2c4   :  { %v313_v13 = vadd.f32 %v311_v11, %v947_v27  ;;  %v314_v14 = vadd.f32 %v312_v12, %v943_v21 }
 0x2c6   :  { %v315_v15 = vsel %vm179_vm1, %v313_v13, -inf  ;;  %v318_v16 = vsel %vm179_vm1, %v314_v14, -inf }
 0x2c7   :  { %316 = vmax.xlane.f32.xlu2 %v315_v15  ;;  %319 = vmax.xlane.f32.xlu0 %v318_v16 }
 0x33a   :  { %v317_v17 = vpop.xlane.xlu2 %316  ;;  %v320_v18 = vpop.xlane.xlu0 %319 }
 0x33b   :  { %v321_v19 = vsub.f32 %v313_v13, %v317_v17  ;;  %v322_v20 = vsub.f32 %v314_v14, %v320_v18 }
 0x33d   :  { %v323_v22 = vmul.f32 1.442695, %v321_v19  ;;  %v325_v23 = vmul.f32 1.442695, %v322_v20  ;;  %v549_v20 = vld [vmem:[#allocation2] sm:$0x1] }
 0x33f   :  { %686 = vpow2.f32 %v323_v22  ;;  %v796_v22 = vmov 0  }
 0x340   :  { %688 = vpow2.f32 %v325_v23  ;;  %669 = vset.pattern.permute.xlu0 %v796_v22  ;;  %v675_v23 = vld [vmem:[%s1058_s13] ss:$0 sm:$0xff] }
 0x345   :  { %v687_v24 = vpop.eup %686 }
 0x346   :  { %v689_v25 = vpop.eup %688  ;;  %v327_v26 = vsel %vm179_vm1, %v687_v24, 0.0 }
 0x347   :  { %328 = vadd.xlane.f32.xlu1 %v327_v26  ;;  %v330_v28 = vsel %vm179_vm1, %v689_v25, 0.0 }
 0x348   :  { %331 = vadd.xlane.f32.xlu2 %v330_v28 }
 0x3ba   :  { %v329_v30 = vpop.xlane.xlu1 %328 }
 0x3bb   :  { %690 = vrcp.f32 %v329_v30  ;;  %v332_v31 = vpop.xlane.xlu2 %331 }
 0x3bc   :  { %692 = vrcp.f32 %v332_v31 }
 0x3c1   :  { %v691_v32 = vpop.eup %690 }
 0x3c2   :  { %v335_v33 = vmul.f32 %v691_v32, %v687_v24  ;;  %v693_v34 = vpop.eup %692  ;;  %v676_v24 = vld [vmem:[%s1060_s15] ss:$0 sm:$0xff] }
 0x3c3   :  { %v336_v35 = vmul.f32 %v693_v34, %v689_v25  ;;  %v519_v34 = vld [vmem:[%s1059_s14] sm:$0x1]  ;;  %s797_s14 = smov 16  }
 0x3c4   :  { %648 = vmatmul.msk.f32.vlgmr.msra.gmra.mxu3 %vm179_vm1, %v335_v33 }
 0x3cc   :  { %649 = vmatmul.msk.f32.gmra.mxu3 %vm179_vm1, %v336_v35 }
 0x447   :  { %v364_v40 = vpop.f32.mrf.mxu3 }
 0x448   :  { %v365_v41 = vadd.f32 %v673_v39, %v364_v40 }
 0x44a   :  { %v370_v43 = vmax.f32 %v365_v41, 0.0 }
 0x44c   :  { %653 = vmatmul.msk.f32.vlgmr.msrb.gmra.mxu1 %vm106_vm0, %v370_v43  ;;  %v376_v44 = vmul.f32 %v674_v42, %v370_v43 }
 0x44e   :  { %v378_v45 = vsel %vm106_vm0, %v376_v44, 0.0 }
 0x44f   :  { %v367_v46 = vpop.f32.mrf.mxu3  ;;  %379 = vadd.xlane.f32.xlu0 %v378_v45 }
 0x450   :  { %v368_v47 = vadd.f32 %v673_v39, %v367_v46 }
 0x452   :  { %v371_v48 = vmax.f32 %v368_v47, 0.0 }
 0x454   :  { %650 = vmatpush.xpose.msk.msrb.mxu2 %vm106_vm0, %v371_v48  ;;  %654 = vmatmul.msk.f32.gmra.mxu1 %vm106_vm0, %v371_v48  ;;  %v377_v49 = vmul.f32 %v674_v42, %v371_v48 }
 0x456   :  { %v381_v50 = vsel %vm106_vm0, %v377_v49, 0.0 }
 0x457   :  { %382 = vadd.xlane.f32.xlu1 %v381_v50 }
 0x458   :  { %651 = vmatpush.xpose.msk.msrb.mxu2 %vm106_vm0, %v370_v43 }
 0x45b   :  { %652 = vmatmul.msk.f32.vlgmr.msrb.gmra.mxu2 %vm106_vm0, %v384_v51 }
 0x4c2   :  { %v380_v56 = vpop.xlane.xlu0 %379 }
 0x4c9   :  { %v435_v52 = vpop.f32.mrf.mxu1 }
 0x4ca   :  { %v383_v57 = vpop.xlane.xlu1 %382 }
 0x4d1   :  { %v438_v53 = vpop.f32.mrf.mxu1 }
 0x4d2   :  { %496 = vmatpush.msra.mxu2 %v438_v53 }
 0x4d4   :  { %497 = vmatpush.msra.mxu2 %v435_v52 }
 0x4de   :  { %v411_v54 = vpop.f32.mrf.mxu2 }
 0x4df   :  { %v441_v55 = vperm.slane %v411_v54, 0 }
 0x4e1   :  { %v442_v58 = vadd.f32 %v441_v55, %v380_v56  ;;  %v443_v59 = vadd.f32 %v441_v55, %v383_v57 }
 0x4e3   :  { %v444_v60 = vmul.f32 0.2, %v442_v58  ;;  %v445_v61 = vmul.f32 0.2, %v443_v59 }
 0x4e5   :  { %v447_v62 = vmax.f32 %v443_v59, %v445_v61  ;;  %v446_v63 = vmax.f32 %v442_v58, %v444_v60 }
 0x4e7   :  { %v449_v0 = vadd.f32 %v447_v62, %v943_v21  ;;  %v448_v1 = vadd.f32 %v446_v63, %v947_v27 }
 0x4e9   :  { %v453_v2 = vsel %vm179_vm1, %v449_v0, -inf  ;;  %v450_v3 = vsel %vm179_vm1, %v448_v1, -inf }
 0x4ea   :  { %454 = vmax.xlane.f32.xlu0 %v453_v2  ;;  %451 = vmax.xlane.f32.xlu2 %v450_v3 }
 0x4fe   :  { %552 = vperm.xlu0 %669, %v549_v20  }
 0x55d   :  { %v452_v4 = vpop.xlane.xlu2 %451  ;;  %v455_v5 = vpop.xlane.xlu0 %454 }
 0x55e   :  { %v456_v6 = vsub.f32 %v448_v1, %v452_v4  ;;  %v457_v7 = vsub.f32 %v449_v0, %v455_v5 }
 0x560   :  { %v458_v8 = vmul.f32 1.442695, %v456_v6  ;;  %v460_v9 = vmul.f32 1.442695, %v457_v7  ;;  %v677_v7 = vld [vmem:[#allocation3] ss:$0 sm:$0xff] }
 0x562   :  { %694 = vpow2.f32 %v458_v8 }
 0x563   :  { %696 = vpow2.f32 %v460_v9 }
 0x568   :  { %v695_v10 = vpop.eup %694 }
 0x569   :  { %v697_v11 = vpop.eup %696  ;;  %v462_v12 = vsel %vm179_vm1, %v695_v10, 0.0 }
 0x56a   :  { %463 = vadd.xlane.f32.xlu1 %v462_v12  ;;  %v465_v13 = vsel %vm179_vm1, %v697_v11, 0.0 }
 0x56b   :  { %466 = vadd.xlane.f32.xlu2 %v465_v13 }
 0x570   :  { %v553_v35 = vpop.permute.xlu0 %552 }
 0x571   :  { %v555_v36 = vperm.slane %v553_v35, 0 }
 0x5dd   :  { %v464_v14 = vpop.xlane.xlu1 %463 }
 0x5de   :  { %698 = vrcp.f32 %v464_v14  ;;  %v467_v15 = vpop.xlane.xlu2 %466 }
 0x5df   :  { %700 = vrcp.f32 %v467_v15 }
 0x5e4   :  { %v699_v16 = vpop.eup %698 }
 0x5e5   :  { %v470_v17 = vmul.f32 %v699_v16, %v695_v10  ;;  %v701_v18 = vpop.eup %700 }
 0x5e6   :  { %v471_v19 = vmul.f32 %v701_v18, %v697_v11 }
 0x5e7   :  { %655 = vmatmul.msk.f32.vlgmr.msra.gmra.mxu2 %vm179_vm1, %v470_v17 }
 0x5ef   :  { %656 = vmatmul.msk.f32.gmra.mxu2 %vm179_vm1, %v471_v19 }
 0x66a   :  { %v499_v25 = vpop.f32.mrf.mxu2 }
 0x66b   :  { %v500_v26 = vadd.f32 %v675_v23, %v499_v25 }
 0x66d   :  { %505 = vst.msk [vmem:[#allocation9] sm:$0xff] %vm179_vm1, %v500_v26  ;;  %v511_v28 = vmul.f32 %v676_v24, %v500_v26 }
 0x66f   :  { %v513_v29 = vsel %vm179_vm1, %v511_v28, 0.0 }
 0x670   :  { %514 = vadd.xlane.f32.xlu1 %v513_v29 }
 0x672   :  { %v502_v30 = vpop.f32.mrf.mxu2 }
 0x673   :  { %v503_v31 = vadd.f32 %v675_v23, %v502_v30 }
 0x675   :  { %506 = vst.msk [vmem:[#allocation9 + $0x8] sm:$0xff] %vm179_vm1, %v503_v31  ;;  %657 = vmatpush.xpose.msk.msra.mxu0 %vm179_vm1, %v503_v31  ;;  %v512_v32 = vmul.f32 %v676_v24, %v503_v31 }
 0x677   :  { %v516_v33 = vsel %vm179_vm1, %v512_v32, 0.0 }
 0x678   :  { %517 = vadd.xlane.f32.xlu2 %v516_v33 }
 0x679   :  { %658 = vmatpush.xpose.msk.msra.mxu0 %vm179_vm1, %v500_v26 }
 0x67c   :  { %659 = vmatmul.msk.f32.vlgmr.msra.gmra.mxu0 %vm179_vm1, %v519_v34 }
 0x6e3   :  { %v515_v40 = vpop.xlane.xlu1 %514 }
 0x6eb   :  { %v518_v41 = vpop.xlane.xlu2 %517 }
 0x6f9   :  { %v546_v37 = vpop.f32.mrf.mxu0 }
 0x6fa   :  { %v556_v38 = vmul.f32 %v555_v36, %v546_v37  ;;  %v588_v0 = vperm.slane %v546_v37, 0 }
 0x6fc   :  { %v557_v39 = vperm.slane %v556_v38, 0 }
 0x6fe   :  { %v558_v42 = vadd.f32 %v557_v39, %v515_v40  ;;  %v559_v43 = vadd.f32 %v557_v39, %v518_v41 }
 0x700   :  { %v560_v44 = vmul.f32 0.2, %v558_v42  ;;  %v561_v45 = vmul.f32 0.2, %v559_v43 }
 0x702   :  { %v563_v46 = vmax.f32 %v559_v43, %v561_v45  ;;  %v562_v47 = vmax.f32 %v558_v42, %v560_v44 }
 0x704   :  { %v565_v48 = vadd.f32 %v563_v46, %v943_v21  ;;  %v564_v49 = vadd.f32 %v562_v47, %v947_v27 }
 0x706   :  { %v569_v50 = vsel %vm179_vm1, %v565_v48, -inf  ;;  %v566_v51 = vsel %vm179_vm1, %v564_v49, -inf }
 0x707   :  { %570 = vmax.xlane.f32.xlu2 %v569_v50  ;;  %567 = vmax.xlane.f32.xlu1 %v566_v51 }
 0x77a   :  { %v571_v52 = vpop.xlane.xlu2 %570  ;;  %v568_v53 = vpop.xlane.xlu1 %567 }
 0x77b   :  { %v573_v54 = vsub.f32 %v565_v48, %v571_v52  ;;  %v572_v55 = vsub.f32 %v564_v49, %v568_v53 }
 0x77d   :  { %v576_v56 = vmul.f32 1.442695, %v573_v54  ;;  %v574_v57 = vmul.f32 1.442695, %v572_v55 }
 0x77f   :  { %702 = vpow2.f32 %v576_v56 }
 0x780   :  { %704 = vpow2.f32 %v574_v57 }
 0x785   :  { %v703_v58 = vpop.eup %702 }
 0x786   :  { %v705_v59 = vpop.eup %704  ;;  %v581_v21 = vsel %vm179_vm1, %v703_v58, 0.0 }
 0x787   :  { %582 = vadd.xlane.f32.xlu2 %v581_v21  ;;  %v578_v27 = vsel %vm179_vm1, %v705_v59, 0.0 }
 0x788   :  { %579 = vadd.xlane.f32.xlu1 %v578_v27 }
 0x7fa   :  { %v583_v60 = vpop.xlane.xlu2 %582 }
 0x7fb   :  { %706 = vrcp.f32 %v583_v60  ;;  %v580_v61 = vpop.xlane.xlu1 %579 }
 0x7fc   :  { %708 = vrcp.f32 %v580_v61 }
 0x801   :  { %v707_v62 = vpop.eup %706 }
 0x802   :  { %v709_v63 = vpop.eup %708  ;;  %v587_v1 = vmul.f32 %v707_v62, %v703_v58 }
 0x803   :  { %v586_v2 = vmul.f32 %v709_v63, %v705_v59 }
 0x804   :  { %v590_v3 = vmul.f32 %v588_v0, %v587_v1 }
 0x805   :  { %v589_v4 = vmul.f32 %v588_v0, %v586_v2 }
 0x806   :  { %v594_v5 = vsel %vm179_vm1, %v590_v3, 0.0 }
 0x807   :  { %595 = vadd.xlane.f32.xlu2 %v594_v5  ;;  %v591_v6 = vsel %vm179_vm1, %v589_v4, 0.0 }
 0x808   :  { %592 = vadd.xlane.f32.xlu1 %v591_v6 }
 0x87a   :  { %v596_v8 = vpop.xlane.xlu2 %595 }
 0x87b   :  { %v602_v9 = vadd.f32 %v677_v7, %v596_v8  ;;  %v593_v10 = vpop.xlane.xlu1 %592 }
 0x87c   :  { %v601_v11 = vadd.f32 %v677_v7, %v593_v10 }
 0x87d   :  { %710 = vtanh.f32 %v602_v9 }
 0x87e   :  { %712 = vtanh.f32 %v601_v11 }
 0x883   :  { %v711_v12 = vpop.eup %710 }
 0x884   :  { %v713_v13 = vpop.eup %712  ;;  %609 = vrot.lane.b32.xlu2 %v711_v12, %s797_s14 }
 0x885   :  { %607 = vrot.lane.b32.xlu1 %v713_v13, %s797_s14 }
 0x8de   :  { %v610_v14 = vpop.permute.xlu2 %609 }
 0x8df   :  { %615 = vst.msk [vmem:[#allocation9 + $0x8] sm:$0xff] %vm613_vm2, %v610_v14 }
 0x8f7   :  { %v608_v15 = vpop.permute.xlu1 %607 }
 0x8f8   :  { %614 = vst.msk [vmem:[#allocation9] sm:$0xff] %vm613_vm2, %v608_v15 }
 0x8f9   :  { %628 = dma.vmem_to_hbm [thread:$0]  %s621_s6, 256, %s623_s29, [#allocation6], %s793_s24, %s793_s24, %s794_s25  }
 0x8fa   :  { %790 = dma.done.wait [#allocation6], 256  }
 0x8fb   :  { %791 = vsyncadd [#allocation6], 4294967040 }
 0x8fc   :  { %633 = vsyncpa [#allocation5], 1 }
 0x8fd   :  { %634 = vsyncpa [#allocation8], 1 }
 0x8fe   :  { %635 = vsyncpa [#allocation6], 1 }

</bundles_post_ra>
